<compile_context>
chip_gen: v7x
topology: tpu7x:2x2x1
jax: 0.10.0
libtpu: 0.0.40
codegen_flags: <defaults>
</compile_context>

<pallas_src>
import jax
import jax.numpy as jnp
from jax.experimental import pallas as pl
from jax.experimental.pallas import tpu as pltpu

_SUBLANE = 8  # f32 sublane granule


def _mlp_kernel(x_ref, w1_ref, b1_ref, w2_ref, b2_ref, o_ref):
    # fc1: [TB, D_in] @ [D_in, H] + [1, H]; ReLU rides in VALU slots under MXU work.
    h = jnp.dot(x_ref[...], w1_ref[...], preferred_element_type=jnp.float32)
    h = jnp.maximum(h + b1_ref[...], 0.0)
    # fc2: [TB, H] @ [H, D_out] + [1, D_out]
    y = jnp.dot(h, w2_ref[...], preferred_element_type=jnp.float32)
    o_ref[...] = (y + b2_ref[...]).astype(o_ref.dtype)


def _round_up(n, m):
    return ((n + m - 1) // m) * m


def _choose_batch_tile(batch):
    if batch <= 128:
        # Single full-extent tile: exactly one grid step (dispatch overhead dominates
        # at toy sizes); full-extent is legal for any row count / dtype.
        return batch
    # Mem-bound regime: big tiles (fewer ~0.35us grid steps, better DMA efficiency),
    # but cap so the grid keeps >=4 steps -> both v7x TensorCores stay fed.
    return min(1024, _round_up(pl.cdiv(batch, 4), _SUBLANE))


@jax.jit
def basic_trajectory_model(x, w1, b1, w2, b2):
    """x: [B, D_in]; w1: [D_in, H]; b1: [H]; w2: [H, D_out]; b2: [D_out]."""
    B, D_in = x.shape
    H = w1.shape[1]
    D_out = w2.shape[1]

    TB = _choose_batch_tile(B)
    grid = (pl.cdiv(B, TB),)  # ragged last block if TB does not divide B

    # Free metadata reshapes under jit (no separate dispatch).
    b1_2d = b1.reshape(1, H)
    b2_2d = b2.reshape(1, D_out)

    # VMEM guard (v7x: 64 MiB physical / 32 MiB default scoped): raise the scoped
    # limit only when the double-buffered x/out tiles + resident weights need it.
    itemsize = jnp.dtype(x.dtype).itemsize
    vmem_est = itemsize * (2 * TB * D_in + 2 * TB * D_out + TB * H
                           + D_in * H + H * D_out + H + D_out)
    cp_kwargs = dict(dimension_semantics=("parallel",))
    if vmem_est > (24 << 20):
        cp_kwargs["vmem_limit_bytes"] = int(min(2 * vmem_est, 100 << 20))
    # TODO(synk): for non-toy hidden dims on v7x, add a K/N-tiled fallback (extra grid
    # axis over D_in or H) instead of keeping both weight matrices VMEM-resident.

    return pl.pallas_call(
        _mlp_kernel,
        out_shape=jax.ShapeDtypeStruct((B, D_out), x.dtype),
        grid=grid,
        in_specs=[
            # streamed per batch tile
            pl.BlockSpec((TB, D_in), lambda i: (i, 0)),
            # weights / biases: constant index_map -> VMEM-resident across the grid
            pl.BlockSpec((D_in, H), lambda i: (0, 0)),
            pl.BlockSpec((1, H), lambda i: (0, 0)),
            pl.BlockSpec((H, D_out), lambda i: (0, 0)),
            pl.BlockSpec((1, D_out), lambda i: (0, 0)),
        ],
        out_specs=pl.BlockSpec((TB, D_out), lambda i: (i, 0)),
        compiler_params=pltpu.CompilerParams(**cp_kwargs),
    )(x, w1, b1_2d, w2, b2_2d)


def _reference(x, w1, b1, w2, b2):
    hi = jax.lax.Precision.HIGHEST
    h = jnp.maximum(jnp.dot(x, w1, precision=hi) + b1, 0.0)
    return jnp.dot(h, w2, precision=hi) + b2


if __name__ == "__main__":
    # Shapes implied by the module: x is [batch, input_dim]
    batch, input_dim, hidden_dim, output_dim = 8, 16, 32, 8

    key = jax.random.PRNGKey(0)
    kx, k1, kb1, k2, kb2 = jax.random.split(key, 5)

    x = jax.random.normal(kx, (batch, input_dim), dtype=jnp.float32)

    # Deterministic param init (Kaiming-uniform-like bounds as in nn.Linear),
    # stored pre-transposed as [in_features, out_features].
    lim1 = 1.0 / (input_dim ** 0.5)
    w1 = jax.random.uniform(k1, (input_dim, hidden_dim), jnp.float32, -lim1, lim1)
    b1 = jax.random.uniform(kb1, (hidden_dim,), jnp.float32, -lim1, lim1)

    lim2 = 1.0 / (hidden_dim ** 0.5)
    w2 = jax.random.uniform(k2, (hidden_dim, output_dim), jnp.float32, -lim2, lim2)
    b2 = jax.random.uniform(kb2, (output_dim,), jnp.float32, -lim2, lim2)

    out = jax.block_until_ready(basic_trajectory_model(x, w1, b1, w2, b2))
    ref = _reference(x, w1, b1, w2, b2)
    assert out.shape == (batch, output_dim)
    assert jnp.allclose(out, ref, atol=1e-5, rtol=1e-5)

    # Multi-step grid path (evenly divisible batch).
    xb = jax.random.normal(kx, (512, input_dim), dtype=jnp.float32)
    out_big = jax.block_until_ready(basic_trajectory_model(xb, w1, b1, w2, b2))
    assert out_big.shape == (512, output_dim)
    assert jnp.allclose(out_big, _reference(xb, w1, b1, w2, b2), atol=1e-5, rtol=1e-5)

    # Ragged last block path (batch not a multiple of the tile).
    xr = jax.random.normal(kx, (300, input_dim), dtype=jnp.float32)
    out_rag = jax.block_until_ready(basic_trajectory_model(xr, w1, b1, w2, b2))
    assert out_rag.shape == (300, output_dim)
    assert jnp.allclose(out_rag, _reference(xr, w1, b1, w2, b2), atol=1e-5, rtol=1e-5)

    print("KERNEL_OK")
</pallas_src>

<mosaic_0001>
module attributes {stable_mosaic.version = 11 : i64} {
  func.func @_mlp_kernel(%arg0: i32, %arg1: memref<8x16xf32, #tpu.memory_space<vmem>>, %arg2: memref<16x32xf32, #tpu.memory_space<vmem>>, %arg3: memref<1x32xf32, #tpu.memory_space<vmem>>, %arg4: memref<32x8xf32, #tpu.memory_space<vmem>>, %arg5: memref<1x8xf32, #tpu.memory_space<vmem>>, %arg6: memref<8x8xf32, #tpu.memory_space<vmem>>) attributes {dimension_semantics = [#tpu.dimension_semantics<parallel>], iteration_bounds = array<i64: 1>, scalar_prefetch = 0 : i64, scratch_operands = 0 : i64, tpu.core_type = #tpu.core_type<tc>, window_params = [{transform_indices = @transform_0, window_bounds = array<i64: 8, 16>}, {pipeline_mode = #tpu.pipeline_mode<synchronous>, transform_indices = @transform_1, window_bounds = array<i64: 16, 32>}, {pipeline_mode = #tpu.pipeline_mode<synchronous>, transform_indices = @transform_2, window_bounds = array<i64: 1, 32>}, {pipeline_mode = #tpu.pipeline_mode<synchronous>, transform_indices = @transform_3, window_bounds = array<i64: 32, 8>}, {pipeline_mode = #tpu.pipeline_mode<synchronous>, transform_indices = @transform_4, window_bounds = array<i64: 1, 8>}, {transform_indices = @transform_5, window_bounds = array<i64: 8, 8>}]} {
    %c0 = arith.constant 0 : index
    %c0_0 = arith.constant 0 : index
    %0 = vector.load %arg1[%c0, %c0_0] : memref<8x16xf32, #tpu.memory_space<vmem>>, vector<8x16xf32>
    %c0_1 = arith.constant 0 : index
    %c0_2 = arith.constant 0 : index
    %1 = vector.load %arg2[%c0_1, %c0_2] : memref<16x32xf32, #tpu.memory_space<vmem>>, vector<16x32xf32>
    %cst = arith.constant dense<0.000000e+00> : vector<8x32xf32>
    %2 = tpu.matmul %0, %1, %cst {dimension_numbers = #tpu.dot_dimension_numbers<[1], [0], [0], [1], [0, 0, 1, 1], [], []>} : vector<8x16xf32>, vector<16x32xf32>, vector<8x32xf32> -> vector<8x32xf32>
    %c0_3 = arith.constant 0 : index
    %c0_4 = arith.constant 0 : index
    %3 = vector.load %arg3[%c0_3, %c0_4] : memref<1x32xf32, #tpu.memory_space<vmem>>, vector<1x32xf32>
    %4 = vector.broadcast %3 : vector<1x32xf32> to vector<8x32xf32>
    %5 = arith.addf %2, %4 : vector<8x32xf32>
    %cst_5 = arith.constant 0.000000e+00 : f32
    %6 = vector.broadcast %cst_5 : f32 to vector<8x32xf32>
    %7 = arith.maximumf %5, %6 : vector<8x32xf32>
    %c0_6 = arith.constant 0 : index
    %c0_7 = arith.constant 0 : index
    %8 = vector.load %arg4[%c0_6, %c0_7] : memref<32x8xf32, #tpu.memory_space<vmem>>, vector<32x8xf32>
    %cst_8 = arith.constant dense<0.000000e+00> : vector<8x8xf32>
    %9 = tpu.matmul %7, %8, %cst_8 {dimension_numbers = #tpu.dot_dimension_numbers<[1], [0], [0], [1], [0, 0, 1, 1], [], []>} : vector<8x32xf32>, vector<32x8xf32>, vector<8x8xf32> -> vector<8x8xf32>
    %c0_9 = arith.constant 0 : index
    %c0_10 = arith.constant 0 : index
    %10 = vector.load %arg5[%c0_9, %c0_10] : memref<1x8xf32, #tpu.memory_space<vmem>>, vector<1x8xf32>
    %11 = vector.broadcast %10 : vector<1x8xf32> to vector<8x8xf32>
    %12 = arith.addf %9, %11 : vector<8x8xf32>
    %c0_11 = arith.constant 0 : index
    %c0_12 = arith.constant 0 : index
    %13 = vector.load %arg6[%c0_11, %c0_12] : memref<8x8xf32, #tpu.memory_space<vmem>>, vector<8x8xf32>
    tpu.vector_store %arg6[%c0_11, %c0_12], %12 {strides = array<i32>} : memref<8x8xf32, #tpu.memory_space<vmem>>, vector<8x8xf32>,
    return
  }
  func.func @transform_0(%arg0: i32) -> (i32, i32) {
    %c0_i32 = arith.constant 0 : i32
    %c0_i32_0 = arith.constant 0 : i32
    return %arg0, %c0_i32 : i32, i32
  }
  func.func @transform_1(%arg0: i32) -> (i32, i32) {
    %c0_i32 = arith.constant 0 : i32
    %c0_i32_0 = arith.constant 0 : i32
    %c0_i32_1 = arith.constant 0 : i32
    return %c0_i32, %c0_i32_0 : i32, i32
  }
  func.func @transform_2(%arg0: i32) -> (i32, i32) {
    %c0_i32 = arith.constant 0 : i32
    %c0_i32_0 = arith.constant 0 : i32
    %c0_i32_1 = arith.constant 0 : i32
    return %c0_i32, %c0_i32_0 : i32, i32
  }
  func.func @transform_3(%arg0: i32) -> (i32, i32) {
    %c0_i32 = arith.constant 0 : i32
    %c0_i32_0 = arith.constant 0 : i32
    %c0_i32_1 = arith.constant 0 : i32
    return %c0_i32, %c0_i32_0 : i32, i32
  }
  func.func @transform_4(%arg0: i32) -> (i32, i32) {
    %c0_i32 = arith.constant 0 : i32
    %c0_i32_0 = arith.constant 0 : i32
    %c0_i32_1 = arith.constant 0 : i32
    return %c0_i32, %c0_i32_0 : i32, i32
  }
  func.func @transform_5(%arg0: i32) -> (i32, i32) {
    %c0_i32 = arith.constant 0 : i32
    %c0_i32_0 = arith.constant 0 : i32
    return %arg0, %c0_i32 : i32, i32
  }
}

</mosaic_0001>

<bundles_post_ra>
// kernel: basic_trajectory_model.1
= control target key start
LH: loop header
LB: loop body
LE: loop exit
PB: predicated region body
PF: predicated region fallthrough
CT: control target
= control target key end

     0   :  { %v274_v2 = vmov 0.0|0.0   ;;  %vm275_vm0 = vmmov 0   ;;  %v276_v4 = vmov 0.0   ;;  %s347_s0 = inlined_call_operand.vmem [shape: f32[8,16], index: 0, kind: input, shape index: {}]   ;;  %s348_s1 = inlined_call_operand.vmem [shape: f32[16,32], index: 1, kind: input, shape index: {}]   ;;  %s349_s2 = inlined_call_operand.vmem [shape: f32[1,32], index: 2, kind: input, shape index: {}]   ;;  %s350_s3 = inlined_call_operand.vmem [shape: f32[32,8], index: 3, kind: input, shape index: {}]   ;;  %s351_s4 = inlined_call_operand.vmem [shape: f32[1,8], index: 4, kind: input, shape index: {}]   ;;  %s352_s5 = inlined_call_operand.hbm [shape: f32[8,8], index: 5, kind: output, shape index: {}]  }
   0x1   :  { %v22_v0 = vld [vmem:[%s348_s1] sm:$0xff]  ;;  %v23_v1 = vld [vmem:[%s348_s1 + $0x8] sm:$0xff]  ;;  %237 = vmatprep.subr.bf16.mxu0 %v274_v2  ;;  %223 = vmatprep.mubr.msk.f32.mxu0 %vm275_vm0, %v276_v4 }
   0x2   :  { %v238_v3 = vpack.c.bf16 %v23_v1, %v22_v0  ;;  %v106_v5 = vld [vmem:[%s350_s3] sm:$0xff]  ;;  %v107_v6 = vld [vmem:[%s350_s3 + $0x8] sm:$0xff]  ;;  %240 = vmatprep.subr.bf16.mxu1 %v274_v2  ;;  %234 = vmatprep.mubr.msk.f32.mxu1 %vm275_vm0, %v276_v4 }
   0x3   :  { %v241_v7 = vpack.c.bf16 %v107_v6, %v106_v5 }
   0x4   :  { %10 = vsyncpa [#allocation3], 0  ;;  %239 = vmatpush3.bf16.msra.mxu0 %v238_v3  ;;  %v21_v8 = vld [vmem:[%s347_s0] sm:$0xff]  ;;  %vm31_vm1 = vcmask 130048   ;;  %v108_v9 = vld [vmem:[%s350_s3 + $0x10] sm:$0xff]  ;;  %vm117_vm2 = vcmask 261120  }
   0x5   :  { %242 = vmatpush3.bf16.msra.mxu1 %v241_v7  ;;  %v109_v10 = vld [vmem:[%s350_s3 + $0x18] sm:$0xff]  ;;  %v207_v12 = vld [vmem:[%s349_s2] ss:$0 sm:$0xff]  ;;  %s277_s9 = smov [#allocation2]   ;;  %vm191_vm3 = vcmask 64512  }
   0x6   :  { %243 = vmatprep.subr.bf16.mxu1 %v274_v2  ;;  %v244_v11 = vpack.c.bf16 %v109_v10, %v108_v9  ;;  %v209_v17 = vld [vmem:[%s351_s4] ss:$0 sm:$0xff]  ;;  %s199_s10 = sshll.u32 %s277_s9, 4  ;;  %s200_s10 = int_to_ptr.vmem [resolvable:$true] %s199_s10 }
   0x7   :  { %224 = vmatmul.mubr.msk.f32.vlgmr.msra.gmra.mrb[0].mxu0 %vm31_vm1, %v21_v8  ;;  %s250_s3 = scalar_lea.vmem %s200_s10, 128  ;;  %p255_p1 = scmp.lt.s32.totalorder %s200_s10, %s200_s10 }
   0x8   :  { %p251_p0 = scmp.ne.s32.totalorder %s200_s10, %s250_s3  ;;  %p256_p2 = scmp.lt.s32.totalorder %s250_s3, %s250_s3 }
   0x9   :  { %245 = vmatpush3.bf16.msra.mxu1 %v244_v11 }
   0xa   :  { %p257_p3 = por %p256_p2, %p255_p1 }
   0xc   :  { %p258_p4 = pnand %p257_p3, %p251_p0 }
  0xda   :  { %v101_v13 = vpop.f32.mrb[0].mxu0 }
  0xdb   :  { %v102_v14 = vadd.f32 %v207_v12, %v101_v13  ;;  %v225_v15 = vpop.f32.mrb[1].mxu0 }
  0xdd   :  { %v105_v16 = vmax.f32 %v102_v14, 0.0 }
  0xdf   :  { %235 = vmatmul.mubr.msk.f32.vlgmr.msra.gmra.mrb[0].mxu1 %vm117_vm2, %v105_v16 }
 0x1b2   :  { %v187_v18 = vpop.f32.mrb[0].mxu1 }
 0x1b3   :  { %v188_v19 = vadd.f32 %v209_v17, %v187_v18  ;;  %v236_v20 = vpop.f32.mrb[1].mxu1 }
 0x1b5   :  { %192 = vst.msk [vmem:[#allocation2] sm:$0xff] %vm191_vm3, %v188_v19 }
 0x1b6   :  { %261 = shalt.err (!%p258_p4)
}
 0x1b7   :  { %s262_s12 = scalar_lea.hbm %s352_s5, 128 }
 0x1b8   :  { %p263_p5 = scmp.ne.s32.totalorder %s352_s5, %s262_s12  ;;  %p266_p6 = scmp.lt.u32.totalorder %s262_s12, %s352_s5 }
 0x1ba   :  { %p268_p7 = pnand %p266_p6, %p263_p5 }
 0x1bc   :  { %271 = shalt.err (!%p268_p7)
}
 0x1bd   :  { %202 = dma.vmem_to_hbm [thread:$0]  %s200_s10, 128, %s352_s5, [#allocation3]  }
 0x1be   :  { %272 = dma.done.wait [#allocation3], 128  }
 0x1bf   :  { %273 = vsyncadd [#allocation3], 4294967168 }
 0x1c0   :  { %206 = vsyncpa [#allocation3], 1 }

</bundles_post_ra>
